<compile_context>
chip_gen: v6e
topology: v6e:2x2x1
jax: 0.10.0
libtpu: 0.0.40
codegen_flags: <defaults>
</compile_context>

<pallas_src>
import jax
import jax.numpy as jnp
from jax.experimental import pallas as pl
from jax.experimental.pallas import tpu as pltpu


def _round_up(x, m):
    return ((x + m - 1) // m) * m


def _cdiv(a, b):
    return -(-a // b)


_MAX_TILE_P = 256 * 1024   # global pixel-tile cap: fits v7x's 64 MiB VMEM w/ headroom
_MAX_BATCH_BLOCK = 16      # static unroll bound inside the kernel


def _pointwise_conv_kernel(x_ref, w_ref, b_ref, o_ref):
    # x_ref: (NB, C_in, TP)  pixel-column tile (lane-dense along pixels)
    # w_ref: (C_out, C_in)   resident weights
    # b_ref: (C_out, 1)      bias, lane-broadcast
    # o_ref: (NB, C_out, TP)
    w = w_ref[...]
    b = b_ref[...]
    for i in range(x_ref.shape[0]):  # NB is a small, static block dim
        acc = jnp.dot(w, x_ref[i], preferred_element_type=jnp.float32)
        o_ref[i] = (acc + b).astype(o_ref.dtype)


def _vmem_capacity_bytes():
    try:
        return int(pltpu.get_tpu_info().vmem_capacity_bytes)
    except Exception:
        return 64 << 20   # conservative default: v7x per-TensorCore VMEM


def _choose_tiling(n, p128, max_tile_p):
    """Return (nb_block, tile_p, p_pad).

    nb_block divides n, tile_p % 128 == 0, p_pad % tile_p == 0, p_pad >= p128.
    Extra padding beyond p128 only happens in the rare no-good-divisor case
    and is < one tile.
    """
    max_k = max(1, max_tile_p // 128)
    m = p128 // 128
    if m >= max_k:
        # Large image: split the pixel axis; one image per grid step.
        k = 1
        for cand in range(max_k, 0, -1):
            if m % cand == 0:
                k = cand
                break
        if k * 4 >= max_k:                 # divisor reasonably close to the cap
            return 1, k * 128, p128
        # No good divisor of m: near-cap tiles, pad < one extra tile.
        nt = _cdiv(m, max_k)
        k = _cdiv(m, nt)
        return 1, k * 128, nt * k * 128
    # Small image: whole image per step; pack several images per step so the
    # per-step bytes still amortize the ~0.35us fixed pipeline cost.
    nb_cap = max(1, min(n, max_k // m, _MAX_BATCH_BLOCK))
    nb = 1
    for cand in range(nb_cap, 0, -1):
        if n % cand == 0:
            nb = cand
            break
    return nb, p128, p128


def hist_adjust_forward(x_nchw, weight, bias, *, out_dtype=None, force_pallas=False):
    """1x1 conv forward (Hist_adjust.point_conv).

    x_nchw: (N, C_in, H, W)
    weight: (C_out, C_in) or (C_out, C_in, 1, 1)
    bias:   (C_out,)
    returns (N, C_out, H, W)
    """
    n, c_in, h, w = x_nchw.shape
    if weight.ndim == 4:
        c_out_, wc_in, kh, kw = weight.shape
        assert kh == 1 and kw == 1, (
            "Hist_adjust.point_conv must stay a 1x1 / stride-1 / groups-1 conv")
        weight = weight.reshape(c_out_, wc_in)
    c_out, wc_in = weight.shape
    assert wc_in == c_in, "channel mismatch (groups != 1 not supported)"

    out_dtype = x_nchw.dtype if out_dtype is None else out_dtype
    p = h * w
    itemsize = jnp.dtype(x_nchw.dtype).itemsize
    out_itemsize = jnp.dtype(out_dtype).itemsize

    # --- Tiny problems: a Pallas launch is pure overhead -> plain XLA. ---
    if not force_pallas and n * p * (c_in + c_out) * itemsize < (2 << 20):
        out = jnp.einsum("nchw,oc->nohw", x_nchw, weight) + bias[None, :, None, None]
        return out.astype(out_dtype)

    # --- Pixel-axis tiling sized from the actual VMEM capacity. ---
    p128 = _round_up(p, 128)
    # Double-buffered input block + double-buffered output block (sublane-padded).
    bytes_per_px = 2 * (_round_up(c_in, 8) * itemsize + _round_up(c_out, 8) * out_itemsize)
    vmem_cap = _vmem_capacity_bytes()
    budget = int(0.55 * vmem_cap)
    max_tile_p = max(128, min(_MAX_TILE_P, (budget // bytes_per_px) // 128 * 128))
    # On very large images keep >= ~8 pixel tiles so both TensorCores (v7x
    # megacore) and the double-buffer pipeline stay fed.
    if n < 8:
        per_step_cap = _round_up(_cdiv(p128, 8), 128)
        if per_step_cap >= 64 * 1024:
            max_tile_p = min(max_tile_p, per_step_cap)

    nb_block, tile_p, p_pad = _choose_tiling(n, p128, max_tile_p)

    x_flat = x_nchw.reshape(n, c_in, p)
    if p_pad != p:
        # Padded columns evaluate to `bias` in-kernel; they are sliced off
        # below so they never reach the caller.
        x_flat = jnp.pad(x_flat, ((0, 0), (0, 0), (0, p_pad - p)))

    b_col = bias.reshape(c_out, 1)
    grid = (n // nb_block, p_pad // tile_p)

    block_bytes = bytes_per_px * nb_block * tile_p
    vmem_limit = min(int(0.75 * vmem_cap), max(32 << 20, block_bytes + (8 << 20)))

    out_flat = pl.pallas_call(
        _pointwise_conv_kernel,
        out_shape=jax.ShapeDtypeStruct((n, c_out, p_pad), out_dtype),
        grid_spec=pltpu.PrefetchScalarGridSpec(
            num_scalar_prefetch=0,
            grid=grid,
            in_specs=[
                pl.BlockSpec((nb_block, c_in, tile_p), lambda b, j: (b, 0, j)),
                pl.BlockSpec((c_out, c_in), lambda b, j: (0, 0)),
                pl.BlockSpec((c_out, 1), lambda b, j: (0, 0)),
            ],
            out_specs=pl.BlockSpec((nb_block, c_out, tile_p), lambda b, j: (b, 0, j)),
        ),
        compiler_params=pltpu.CompilerParams(
            # Both grid axes are independent -> shard across megacore / 2 TCs.
            dimension_semantics=("parallel", "parallel"),
            vmem_limit_bytes=vmem_limit,
        ),
    )(x_flat, weight, b_col)

    if p_pad != p:
        out_flat = out_flat[:, :, :p]
    return out_flat.reshape(n, c_out, h, w)


if __name__ == "__main__":
    key = jax.random.PRNGKey(0)
    k_x, k_w, k_b, k_x2 = jax.random.split(key, 4)

    N, C_IN, C_OUT, H, W = 2, 4, 8, 16, 16

    # Deterministic Conv2d-like init (uniform in +/- 1/sqrt(fan_in)).
    fan_in = C_IN  # kernel_size = 1x1
    bound = 1.0 / (fan_in ** 0.5)
    weight = jax.random.uniform(k_w, (C_OUT, C_IN, 1, 1), jnp.float32, -bound, bound)
    bias = jax.random.uniform(k_b, (C_OUT,), jnp.float32, -bound, bound)

    def ref_fn(x):
        w2 = weight.reshape(C_OUT, C_IN)
        return jnp.einsum("nchw,oc->nohw", x, w2) + bias[None, :, None, None]

    # Case 1: aligned pixels (H*W = 256) -> no-pad fast path (batch-packed tile).
    x1 = jax.random.normal(k_x, (N, C_IN, H, W), dtype=jnp.float32)
    out1 = jax.block_until_ready(hist_adjust_forward(x1, weight, bias, force_pallas=True))
    assert out1.shape == (N, C_OUT, H, W)
    assert jnp.allclose(out1, ref_fn(x1), atol=1e-5, rtol=1e-5)

    # Case 2: ragged pixels (H*W = 260) -> exercises the pad-to-128 + slice path.
    x2 = jax.random.normal(k_x2, (N, C_IN, 20, 13), dtype=jnp.float32)
    out2 = jax.block_until_ready(hist_adjust_forward(x2, weight, bias, force_pallas=True))
    assert out2.shape == (N, C_OUT, 20, 13)
    assert jnp.allclose(out2, ref_fn(x2), atol=1e-5, rtol=1e-5)

    # Case 3: tiny-problem XLA fallback path (no Pallas launch).
    out3 = jax.block_until_ready(hist_adjust_forward(x1, weight, bias))
    assert jnp.allclose(out3, ref_fn(x1), atol=1e-5, rtol=1e-5)

    print("KERNEL_OK")
</pallas_src>

<mosaic_0001>
module attributes {stable_mosaic.version = 11 : i64} {
  func.func @_pointwise_conv_kernel(%arg0: i32, %arg1: i32, %arg2: memref<2x4x256xf32, #tpu.memory_space<vmem>>, %arg3: memref<8x4xf32, #tpu.memory_space<vmem>>, %arg4: memref<8x1xf32, #tpu.memory_space<vmem>>, %arg5: memref<2x8x256xf32, #tpu.memory_space<vmem>>) attributes {dimension_semantics = [#tpu.dimension_semantics<parallel>, #tpu.dimension_semantics<parallel>], iteration_bounds = array<i64: 1, 1>, scalar_prefetch = 0 : i64, scratch_operands = 0 : i64, tpu.core_type = #tpu.core_type<tc>, window_params = [{transform_indices = @transform_0, window_bounds = array<i64: 2, 4, 256>}, {pipeline_mode = #tpu.pipeline_mode<synchronous>, transform_indices = @transform_1, window_bounds = array<i64: 8, 4>}, {pipeline_mode = #tpu.pipeline_mode<synchronous>, transform_indices = @transform_2, window_bounds = array<i64: 8, 1>}, {transform_indices = @transform_3, window_bounds = array<i64: 2, 8, 256>}]} {
    %c0 = arith.constant 0 : index
    %c0_0 = arith.constant 0 : index
    %0 = vector.load %arg3[%c0, %c0_0] : memref<8x4xf32, #tpu.memory_space<vmem>>, vector<8x4xf32>
    %c0_1 = arith.constant 0 : index
    %c0_2 = arith.constant 0 : index
    %1 = vector.load %arg4[%c0_1, %c0_2] : memref<8x1xf32, #tpu.memory_space<vmem>>, vector<8x1xf32>
    %c0_3 = arith.constant 0 : index
    %c0_4 = arith.constant 0 : index
    %c0_5 = arith.constant 0 : index
    %2 = vector.load %arg2[%c0_3, %c0_4, %c0_5] : memref<2x4x256xf32, #tpu.memory_space<vmem>>, vector<1x4x256xf32>
    %3 = vector.shape_cast %2 : vector<1x4x256xf32> to vector<4x256xf32>
    %cst = arith.constant dense<0.000000e+00> : vector<8x256xf32>
    %4 = tpu.matmul %0, %3, %cst {dimension_numbers = #tpu.dot_dimension_numbers<[1], [0], [0], [1], [0, 0, 1, 1], [], []>} : vector<8x4xf32>, vector<4x256xf32>, vector<8x256xf32> -> vector<8x256xf32>
    %5 = vector.broadcast %1 : vector<8x1xf32> to vector<8x256xf32>
    %6 = arith.addf %4, %5 : vector<8x256xf32>
    %c0_6 = arith.constant 0 : index
    %c0_7 = arith.constant 0 : index
    %c0_8 = arith.constant 0 : index
    %7 = vector.load %arg5[%c0_6, %c0_7, %c0_8] : memref<2x8x256xf32, #tpu.memory_space<vmem>>, vector<1x8x256xf32>
    %8 = vector.shape_cast %7 : vector<1x8x256xf32> to vector<8x256xf32>
    %9 = vector.shape_cast %6 : vector<8x256xf32> to vector<1x8x256xf32>
    tpu.vector_store %arg5[%c0_6, %c0_7, %c0_8], %9 {strides = array<i32>} : memref<2x8x256xf32, #tpu.memory_space<vmem>>, vector<1x8x256xf32>,
    %c1 = arith.constant 1 : index
    %c0_9 = arith.constant 0 : index
    %c0_10 = arith.constant 0 : index
    %10 = vector.load %arg2[%c1, %c0_9, %c0_10] : memref<2x4x256xf32, #tpu.memory_space<vmem>>, vector<1x4x256xf32>
    %11 = vector.shape_cast %10 : vector<1x4x256xf32> to vector<4x256xf32>
    %cst_11 = arith.constant dense<0.000000e+00> : vector<8x256xf32>
    %12 = tpu.matmul %0, %11, %cst_11 {dimension_numbers = #tpu.dot_dimension_numbers<[1], [0], [0], [1], [0, 0, 1, 1], [], []>} : vector<8x4xf32>, vector<4x256xf32>, vector<8x256xf32> -> vector<8x256xf32>
    %13 = vector.broadcast %1 : vector<8x1xf32> to vector<8x256xf32>
    %14 = arith.addf %12, %13 : vector<8x256xf32>
    %c1_12 = arith.constant 1 : index
    %c0_13 = arith.constant 0 : index
    %c0_14 = arith.constant 0 : index
    %15 = vector.load %arg5[%c1_12, %c0_13, %c0_14] : memref<2x8x256xf32, #tpu.memory_space<vmem>>, vector<1x8x256xf32>
    %16 = vector.shape_cast %15 : vector<1x8x256xf32> to vector<8x256xf32>
    %17 = vector.shape_cast %14 : vector<8x256xf32> to vector<1x8x256xf32>
    tpu.vector_store %arg5[%c1_12, %c0_13, %c0_14], %17 {strides = array<i32>} : memref<2x8x256xf32, #tpu.memory_space<vmem>>, vector<1x8x256xf32>,
    return
  }
  func.func @transform_0(%arg0: i32, %arg1: i32) -> (i32, i32, i32) {
    %c0_i32 = arith.constant 0 : i32
    %c0_i32_0 = arith.constant 0 : i32
    return %arg0, %c0_i32, %arg1 : i32, i32, i32
  }
  func.func @transform_1(%arg0: i32, %arg1: i32) -> (i32, i32) {
    %c0_i32 = arith.constant 0 : i32
    %c0_i32_0 = arith.constant 0 : i32
    %c0_i32_1 = arith.constant 0 : i32
    return %c0_i32, %c0_i32_0 : i32, i32
  }
  func.func @transform_2(%arg0: i32, %arg1: i32) -> (i32, i32) {
    %c0_i32 = arith.constant 0 : i32
    %c0_i32_0 = arith.constant 0 : i32
    %c0_i32_1 = arith.constant 0 : i32
    return %c0_i32, %c0_i32_0 : i32, i32
  }
  func.func @transform_3(%arg0: i32, %arg1: i32) -> (i32, i32, i32) {
    %c0_i32 = arith.constant 0 : i32
    %c0_i32_0 = arith.constant 0 : i32
    return %arg0, %c0_i32, %arg1 : i32, i32, i32
  }
}

</mosaic_0001>

<bundles_post_ra>
// kernel: tpu_custom_call.1
= control target key start
LH: loop header
LB: loop body
LE: loop exit
PB: predicated region body
PF: predicated region fallthrough
CT: control target
= control target key end

     0   :  { %vm29_vm0 = vcmask 1043456   ;;  %v242_v4 = vmov 0.0   ;;  %s286_s0 = inlined_call_operand.vmem [shape: f32[2,4,256], index: 0, kind: input, shape index: {}]   ;;  %s287_s1 = inlined_call_operand.vmem [shape: f32[8,4], index: 1, kind: input, shape index: {}]   ;;  %s288_s2 = inlined_call_operand.vmem [shape: f32[8,1], index: 2, kind: input, shape index: {}]   ;;  %s289_s3 = inlined_call_operand.hbm [shape: f32[2,8,256], index: 3, kind: output, shape index: {}]  }
   0x1   :  { %v17_v0 = vld [vmem:[%s286_s0] sm:$0xff]  ;;  %v208_v1 = vld [vmem:[%s286_s0 + $0x8] sm:$0xff]  ;;  %98 = vmatprep.mubr.f32.mxu0 %v242_v4  ;;  %179 = vmatprep.mubr.f32.mxu1 %v242_v4 }
   0x2   :  { %v24_v2 = vcombine.high %v17_v0, %v17_v0  ;;  %v110_v3 = vcombine.high %v208_v1, %v208_v1 }
   0x3   :  { %8 = vsyncpa [#allocation3], 0  ;;  %v15_v5 = vld [vmem:[%s287_s1] sm:$0xff]  ;;  %vm25_vm1 = vcmask 31744   ;;  %v243_v6 = vmov 0   ;;  %s244_s0 = smov [#allocation2]  }
   0x4   :  { %217 = vset.pattern.permute.xlu0 %v243_v6  ;;  %205 = vmatprep.subr.msk.mxu0 %vm29_vm0, %v24_v2  ;;  %v16_v7 = vld [vmem:[%s288_s2] sm:$0xff]  ;;  %s194_s1 = sshll.u32 %s244_s0, 4  ;;  %s195_s1 = int_to_ptr.vmem [resolvable:$true] %s194_s1 }
   0x5   :  { %209 = vmatprep.subr.msk.mxu1 %vm29_vm0, %v110_v3  ;;  %206 = vmatpush1.msk.msra.mxu0 %vm29_vm0, %v17_v0  ;;  %s220_s2 = scalar_lea.vmem %s195_s1, 512  ;;  %p225_p1 = scmp.lt.s32.totalorder %s195_s1, %s195_s1 }
   0x6   :  { %210 = vmatpush1.msk.msra.mxu1 %vm29_vm0, %v208_v1  ;;  %207 = vmatmul.mubr.msk.f32.vlgmr.msra.gmra.mxu0 %vm25_vm1, %v15_v5  ;;  %p221_p0 = scmp.ne.s32.totalorder %s195_s1, %s220_s2  ;;  %p226_p2 = scmp.lt.s32.totalorder %s220_s2, %s220_s2 }
   0x7   :  { %211 = vmatmul.mubr.msk.f32.vlgmr.msra.gmra.mxu1 %vm25_vm1, %v15_v5  ;;  %20 = vperm.xlu0 %217, %v16_v7  }
   0x8   :  { %p227_p3 = por %p226_p2, %p225_p1 }
   0xa   :  { %p228_p4 = pnand %p227_p3, %p221_p0 }
  0x82   :  { %v21_v8 = vpop.permute.xlu0 %20 }
  0xc6   :  { %v100_v9 = vpop.f32.mrf.mxu0 }
  0xc7   :  { %v181_v10 = vpop.f32.mrf.mxu1  ;;  %v101_v11 = vadd.f32 %v100_v9, %v21_v8 }
  0xc8   :  { %v182_v12 = vadd.f32 %v181_v10, %v21_v8  ;;  %v102_v13 = vpop.f32.mrf.mxu0 }
  0xc9   :  { %v183_v14 = vpop.f32.mrf.mxu1  ;;  %105 = vst [vmem:[#allocation2] sm:$0xff] %v101_v11  ;;  %v103_v15 = vadd.f32 %v102_v13, %v21_v8 }
  0xca   :  { %187 = vst [vmem:[#allocation2 + $0x10] sm:$0xff] %v182_v12  ;;  %v184_v16 = vadd.f32 %v183_v14, %v21_v8 }
  0xcb   :  { %106 = vst [vmem:[#allocation2 + $0x8] sm:$0xff] %v103_v15 }
  0xcc   :  { %188 = vst [vmem:[#allocation2 + $0x18] sm:$0xff] %v184_v16 }
  0xcd   :  { %231 = shalt.err (!%p228_p4)
}
  0xce   :  { %s245_s20 = smov 256   ;;  %s246_s21 = smov 16  }
  0xcf   :  { %200 = dma.vmem_to_hbm [thread:$0]  %s195_s1, 512, %s289_s3, [#allocation3], %s245_s20, %s245_s20, %s246_s21  }
  0xd0   :  { %240 = dma.done.wait [#allocation3], 512  }
  0xd1   :  { %241 = vsyncadd [#allocation3], 4294966784 }
  0xd2   :  { %204 = vsyncpa [#allocation3], 1 }

</bundles_post_ra>
